<compile_context>
chip_gen: v6e
topology: v6e:2x2x1
jax: 0.10.0
libtpu: 0.0.40
codegen_flags: <defaults>
</compile_context>

<pallas_src>
import functools

import jax
import jax.numpy as jnp
from jax.experimental import pallas as pl
from jax.experimental.pallas import tpu as pltpu


def _cdiv(a: int, b: int) -> int:
    return (a + b - 1) // b


def _ceil_to(x: int, m: int) -> int:
    return _cdiv(x, m) * m


def _critic_kernel(obs_ref, act_ref,
                   w1o_ref, w1a_ref, b1_ref,
                   w2_ref, b2_ref,
                   w3_ref, b3_ref,
                   w4_ref, b4_ref,
                   o_ref):
    """Fused 4-layer MLP. One grid step processes a tile of batch rows."""
    wdt = w1o_ref.dtype  # MXU input dtype (bf16 by default, f32 if requested)

    obs = obs_ref[...].astype(wdt)
    act = act_ref[...].astype(wdt)

    # fc1 on the un-concatenated inputs: obs @ W1_obs + act @ W1_act + b1
    h = (jnp.dot(obs, w1o_ref[...], preferred_element_type=jnp.float32)
         + jnp.dot(act, w1a_ref[...], preferred_element_type=jnp.float32)
         + b1_ref[...])
    h = jnp.maximum(h, 0.0)

    h = jnp.dot(h.astype(wdt), w2_ref[...],
                preferred_element_type=jnp.float32) + b2_ref[...]
    h = jnp.maximum(h, 0.0)

    h = jnp.dot(h.astype(wdt), w3_ref[...],
                preferred_element_type=jnp.float32) + b3_ref[...]
    h = jnp.maximum(h, 0.0)

    # fc4 (out_features == 1): VPU multiply + lane reduction (w4 kept f32).
    out = jnp.sum(h * w4_ref[...], axis=-1, keepdims=True) + b4_ref[...]
    o_ref[...] = out.astype(o_ref.dtype)


def prepare_critic_params(params, obs_feature_dim, compute_dtype=jnp.bfloat16):
    """One-time param prep: split fc1's weight (kills the HBM concat), reshape
    biases, and cast matmul weights to the MXU compute dtype."""
    Do = obs_feature_dim
    cd = compute_dtype
    return {
        "w1o": params["w1"][:Do].astype(cd),
        "w1a": params["w1"][Do:].astype(cd),
        "b1": params["b1"].reshape(1, -1).astype(jnp.float32),
        "w2": params["w2"].astype(cd),
        "b2": params["b2"].reshape(1, -1).astype(jnp.float32),
        "w3": params["w3"].astype(cd),
        "b3": params["b3"].reshape(1, -1).astype(jnp.float32),
        # fc4 head stays f32 (tiny, runs on the VPU, avoids extra quant error).
        "w4": params["w4"].reshape(1, -1).astype(jnp.float32),
        "b4": params["b4"].reshape(1, 1).astype(jnp.float32),
    }


def _const_spec(shape):
    """Weight/bias block: constant index_map (resident across all grid steps),
    single-buffered since the block never changes."""
    idx = lambda i: (0, 0)
    try:
        return pl.BlockSpec(shape, idx, pipeline_mode=pl.Buffered(1))
    except TypeError:  # older jax without pipeline_mode kwarg
        return pl.BlockSpec(shape, idx)


@functools.partial(jax.jit, static_argnames=("batch_tile",))
def critic_forward(obs_all, act_all, kparams, batch_tile=2048):
    """Critic forward. obs_all: [B, obs_dim*n], act_all: [B, act_dim*n]."""
    B, Do = obs_all.shape
    _, Da = act_all.shape
    H = kparams["w2"].shape[0]

    wdt = kparams["w2"].dtype
    wbytes = wdt.itemsize
    # Sub-32-bit dtypes pack rows into sublanes: align to 8 (f32) / 16 (bf16).
    row_align = max(8, 32 // wbytes)

    # --- grid / tile selection -------------------------------------------
    # 1) enough steps that tile <= batch_tile
    steps = _cdiv(_ceil_to(B, row_align), batch_tile)
    # 2) >= 2 steps for large batches so both v7x TensorCores get work
    #    ("parallel" batch axis shards across TCs; harmless on v5e/v6e).
    MIN_ROWS_TO_SPLIT = 512
    if B >= MIN_ROWS_TO_SPLIT:
        steps = max(steps, 2)
    # 3) tile divides the padded batch tightly -> padding waste is a few rows,
    #    not up to a full tile.
    tile = _ceil_to(_cdiv(B, steps), row_align)
    B_pad = tile * steps

    if B_pad != B:
        obs_all = jnp.pad(obs_all, ((0, B_pad - B), (0, 0)))
        act_all = jnp.pad(act_all, ((0, B_pad - B), (0, 0)))

    # --- VMEM budget: only raise the scoped limit if we'd exceed defaults ---
    est = (2 * tile * (Do + Da) * obs_all.dtype.itemsize   # double-buffered in-tiles
           + 2 * tile * 4                                  # double-buffered out-tile
           + ((Do + Da) * H + 2 * H * H) * wbytes          # resident matmul weights
           + (4 * H + 1) * 4                               # biases + w4 row (f32)
           + 3 * tile * H * 4)                             # live f32 activations
    vmem_limit = None
    if est > (24 << 20):
        vmem_limit = min(int(est * 3 // 2), 48 << 20)      # safe on v7x (64 MiB phys)

    compiler_params = pltpu.CompilerParams(
        dimension_semantics=("parallel",),
        vmem_limit_bytes=vmem_limit)

    out = pl.pallas_call(
        _critic_kernel,
        out_shape=jax.ShapeDtypeStruct((B_pad, 1), jnp.float32),
        grid_spec=pltpu.PrefetchScalarGridSpec(
            num_scalar_prefetch=0,
            grid=(steps,),
            in_specs=[
                pl.BlockSpec((tile, Do), lambda i: (i, 0)),
                pl.BlockSpec((tile, Da), lambda i: (i, 0)),
                _const_spec(kparams["w1o"].shape),
                _const_spec(kparams["w1a"].shape),
                _const_spec(kparams["b1"].shape),
                _const_spec(kparams["w2"].shape),
                _const_spec(kparams["b2"].shape),
                _const_spec(kparams["w3"].shape),
                _const_spec(kparams["b3"].shape),
                _const_spec(kparams["w4"].shape),
                _const_spec(kparams["b4"].shape),
            ],
            out_specs=pl.BlockSpec((tile, 1), lambda i: (i, 0)),
        ),
        compiler_params=compiler_params,
    )(obs_all, act_all,
      kparams["w1o"], kparams["w1a"], kparams["b1"],
      kparams["w2"], kparams["b2"],
      kparams["w3"], kparams["b3"],
      kparams["w4"], kparams["b4"])

    return out[:B] if B_pad != B else out


def init_critic_params(key, obs_dim, act_dim, n_agents, hidden_dim=256):
    """Deterministic init mirroring the torch module: orthogonal weights
    (gain sqrt(2) for fc1-3, 1.0 for fc4), PyTorch-default uniform biases."""
    input_dim = obs_dim * n_agents + act_dim * n_agents
    keys = jax.random.split(key, 8)

    def ortho(k, fan_in, fan_out, gain):
        # Stored as [in, out] so the kernel does x @ W.
        init = jax.nn.initializers.orthogonal(scale=gain, column_axis=-1)
        return init(k, (fan_in, fan_out), jnp.float32)

    def bias(k, fan_in, fan_out):
        bound = 1.0 / jnp.sqrt(jnp.float32(fan_in))
        return jax.random.uniform(k, (fan_out,), jnp.float32, -bound, bound)

    g = float(jnp.sqrt(2.0))
    return {
        "w1": ortho(keys[0], input_dim, hidden_dim, g),
        "b1": bias(keys[1], input_dim, hidden_dim),
        "w2": ortho(keys[2], hidden_dim, hidden_dim, g),
        "b2": bias(keys[3], hidden_dim, hidden_dim),
        "w3": ortho(keys[4], hidden_dim, hidden_dim, g),
        "b3": bias(keys[5], hidden_dim, hidden_dim),
        "w4": ortho(keys[6], hidden_dim, 1, 1.0),
        "b4": bias(keys[7], hidden_dim, 1),
    }


def _reference_forward(obs_all, act_all, params):
    x = jnp.concatenate([obs_all, act_all], axis=1)
    h = jax.nn.relu(x @ params["w1"] + params["b1"])
    h = jax.nn.relu(h @ params["w2"] + params["b2"])
    h = jax.nn.relu(h @ params["w3"] + params["b3"])
    return h @ params["w4"] + params["b4"]


if __name__ == "__main__":
    # Small, module-consistent shapes: 3 agents, obs_dim=8, act_dim=4 -> D=36.
    obs_dim, act_dim, n_agents, hidden_dim = 8, 4, 3, 32
    Do = obs_dim * n_agents
    Da = act_dim * n_agents

    key = jax.random.PRNGKey(0)
    k_obs, k_act, k_par = jax.random.split(key, 3)
    params = init_critic_params(k_par, obs_dim, act_dim, n_agents, hidden_dim)

    batch = 16
    obs_all = jax.random.normal(k_obs, (batch, Do), jnp.float32)
    act_all = jax.random.normal(k_act, (batch, Da), jnp.float32)
    ref = _reference_forward(obs_all, act_all, params)

    # Case 1: f32 compute path -> tight structural correctness check.
    kp_f32 = prepare_critic_params(params, Do, compute_dtype=jnp.float32)
    out = jax.block_until_ready(critic_forward(obs_all, act_all, kp_f32))
    assert out.shape == (batch, 1), out.shape
    assert jnp.allclose(out, ref, atol=5e-4, rtol=5e-4), (
        float(jnp.max(jnp.abs(out - ref))))

    # Case 2: default bf16 MXU path (f32 accumulation) -> looser tolerance is
    # expected quantization error, not a kernel bug.
    kp_bf16 = prepare_critic_params(params, Do)
    out_bf = jax.block_until_ready(critic_forward(obs_all, act_all, kp_bf16))
    assert out_bf.shape == (batch, 1), out_bf.shape
    assert jnp.allclose(out_bf, ref, atol=1e-1, rtol=1e-1), (
        float(jnp.max(jnp.abs(out_bf - ref))))

    # Case 3: ragged batch large enough to force >=2 grid steps (v7x dual-TC
    # path) and exercise the tight-padding + tail-slice handling.
    batch2 = 530
    obs2 = jax.random.normal(jax.random.PRNGKey(1), (batch2, Do), jnp.float32)
    act2 = jax.random.normal(jax.random.PRNGKey(2), (batch2, Da), jnp.float32)
    out2 = jax.block_until_ready(critic_forward(obs2, act2, kp_bf16))
    ref2 = _reference_forward(obs2, act2, params)
    assert out2.shape == (batch2, 1), out2.shape
    assert jnp.allclose(out2, ref2, atol=1e-1, rtol=1e-1), (
        float(jnp.max(jnp.abs(out2 - ref2))))

    print("KERNEL_OK")
</pallas_src>

<mosaic_0001>
module attributes {stable_mosaic.version = 11 : i64} {
  func.func @_critic_kernel(%arg0: i32, %arg1: memref<16x24xf32, #tpu.memory_space<vmem>>, %arg2: memref<16x12xf32, #tpu.memory_space<vmem>>, %arg3: memref<24x32xf32, #tpu.memory_space<vmem>>, %arg4: memref<12x32xf32, #tpu.memory_space<vmem>>, %arg5: memref<1x32xf32, #tpu.memory_space<vmem>>, %arg6: memref<32x32xf32, #tpu.memory_space<vmem>>, %arg7: memref<1x32xf32, #tpu.memory_space<vmem>>, %arg8: memref<32x32xf32, #tpu.memory_space<vmem>>, %arg9: memref<1x32xf32, #tpu.memory_space<vmem>>, %arg10: memref<1x32xf32, #tpu.memory_space<vmem>>, %arg11: memref<1x1xf32, #tpu.memory_space<vmem>>, %arg12: memref<16x1xf32, #tpu.memory_space<vmem>>) attributes {dimension_semantics = [#tpu.dimension_semantics<parallel>], iteration_bounds = array<i64: 1>, scalar_prefetch = 0 : i64, scratch_operands = 0 : i64, tpu.core_type = #tpu.core_type<tc>, window_params = [{transform_indices = @transform_0, window_bounds = array<i64: 16, 24>}, {transform_indices = @transform_1, window_bounds = array<i64: 16, 12>}, {pipeline_mode = #tpu.pipeline_mode<synchronous>, transform_indices = @transform_2, window_bounds = array<i64: 24, 32>}, {pipeline_mode = #tpu.pipeline_mode<synchronous>, transform_indices = @transform_3, window_bounds = array<i64: 12, 32>}, {pipeline_mode = #tpu.pipeline_mode<synchronous>, transform_indices = @transform_4, window_bounds = array<i64: 1, 32>}, {pipeline_mode = #tpu.pipeline_mode<synchronous>, transform_indices = @transform_5, window_bounds = array<i64: 32, 32>}, {pipeline_mode = #tpu.pipeline_mode<synchronous>, transform_indices = @transform_6, window_bounds = array<i64: 1, 32>}, {pipeline_mode = #tpu.pipeline_mode<synchronous>, transform_indices = @transform_7, window_bounds = array<i64: 32, 32>}, {pipeline_mode = #tpu.pipeline_mode<synchronous>, transform_indices = @transform_8, window_bounds = array<i64: 1, 32>}, {pipeline_mode = #tpu.pipeline_mode<synchronous>, transform_indices = @transform_9, window_bounds = array<i64: 1, 32>}, {pipeline_mode = #tpu.pipeline_mode<synchronous>, transform_indices = @transform_10, window_bounds = array<i64: 1, 1>}, {transform_indices = @transform_11, window_bounds = array<i64: 16, 1>}]} {
    %c0 = arith.constant 0 : index
    %c0_0 = arith.constant 0 : index
    %0 = vector.load %arg1[%c0, %c0_0] : memref<16x24xf32, #tpu.memory_space<vmem>>, vector<16x24xf32>
    %c0_1 = arith.constant 0 : index
    %c0_2 = arith.constant 0 : index
    %1 = vector.load %arg2[%c0_1, %c0_2] : memref<16x12xf32, #tpu.memory_space<vmem>>, vector<16x12xf32>
    %c0_3 = arith.constant 0 : index
    %c0_4 = arith.constant 0 : index
    %2 = vector.load %arg3[%c0_3, %c0_4] : memref<24x32xf32, #tpu.memory_space<vmem>>, vector<24x32xf32>
    %cst = arith.constant dense<0.000000e+00> : vector<16x32xf32>
    %3 = tpu.matmul %0, %2, %cst {dimension_numbers = #tpu.dot_dimension_numbers<[1], [0], [0], [1], [0, 0, 1, 1], [], []>} : vector<16x24xf32>, vector<24x32xf32>, vector<16x32xf32> -> vector<16x32xf32>
    %c0_5 = arith.constant 0 : index
    %c0_6 = arith.constant 0 : index
    %4 = vector.load %arg4[%c0_5, %c0_6] : memref<12x32xf32, #tpu.memory_space<vmem>>, vector<12x32xf32>
    %cst_7 = arith.constant dense<0.000000e+00> : vector<16x32xf32>
    %5 = tpu.matmul %1, %4, %cst_7 {dimension_numbers = #tpu.dot_dimension_numbers<[1], [0], [0], [1], [0, 0, 1, 1], [], []>} : vector<16x12xf32>, vector<12x32xf32>, vector<16x32xf32> -> vector<16x32xf32>
    %6 = arith.addf %3, %5 : vector<16x32xf32>
    %c0_8 = arith.constant 0 : index
    %c0_9 = arith.constant 0 : index
    %7 = vector.load %arg5[%c0_8, %c0_9] : memref<1x32xf32, #tpu.memory_space<vmem>>, vector<1x32xf32>
    %8 = vector.broadcast %7 : vector<1x32xf32> to vector<16x32xf32>
    %9 = arith.addf %6, %8 : vector<16x32xf32>
    %cst_10 = arith.constant 0.000000e+00 : f32
    %10 = vector.broadcast %cst_10 : f32 to vector<16x32xf32>
    %11 = arith.maximumf %9, %10 : vector<16x32xf32>
    %c0_11 = arith.constant 0 : index
    %c0_12 = arith.constant 0 : index
    %12 = vector.load %arg6[%c0_11, %c0_12] : memref<32x32xf32, #tpu.memory_space<vmem>>, vector<32x32xf32>
    %cst_13 = arith.constant dense<0.000000e+00> : vector<16x32xf32>
    %13 = tpu.matmul %11, %12, %cst_13 {dimension_numbers = #tpu.dot_dimension_numbers<[1], [0], [0], [1], [0, 0, 1, 1], [], []>} : vector<16x32xf32>, vector<32x32xf32>, vector<16x32xf32> -> vector<16x32xf32>
    %c0_14 = arith.constant 0 : index
    %c0_15 = arith.constant 0 : index
    %14 = vector.load %arg7[%c0_14, %c0_15] : memref<1x32xf32, #tpu.memory_space<vmem>>, vector<1x32xf32>
    %15 = vector.broadcast %14 : vector<1x32xf32> to vector<16x32xf32>
    %16 = arith.addf %13, %15 : vector<16x32xf32>
    %cst_16 = arith.constant 0.000000e+00 : f32
    %17 = vector.broadcast %cst_16 : f32 to vector<16x32xf32>
    %18 = arith.maximumf %16, %17 : vector<16x32xf32>
    %c0_17 = arith.constant 0 : index
    %c0_18 = arith.constant 0 : index
    %19 = vector.load %arg8[%c0_17, %c0_18] : memref<32x32xf32, #tpu.memory_space<vmem>>, vector<32x32xf32>
    %cst_19 = arith.constant dense<0.000000e+00> : vector<16x32xf32>
    %20 = tpu.matmul %18, %19, %cst_19 {dimension_numbers = #tpu.dot_dimension_numbers<[1], [0], [0], [1], [0, 0, 1, 1], [], []>} : vector<16x32xf32>, vector<32x32xf32>, vector<16x32xf32> -> vector<16x32xf32>
    %c0_20 = arith.constant 0 : index
    %c0_21 = arith.constant 0 : index
    %21 = vector.load %arg9[%c0_20, %c0_21] : memref<1x32xf32, #tpu.memory_space<vmem>>, vector<1x32xf32>
    %22 = vector.broadcast %21 : vector<1x32xf32> to vector<16x32xf32>
    %23 = arith.addf %20, %22 : vector<16x32xf32>
    %cst_22 = arith.constant 0.000000e+00 : f32
    %24 = vector.broadcast %cst_22 : f32 to vector<16x32xf32>
    %25 = arith.maximumf %23, %24 : vector<16x32xf32>
    %c0_23 = arith.constant 0 : index
    %c0_24 = arith.constant 0 : index
    %26 = vector.load %arg10[%c0_23, %c0_24] : memref<1x32xf32, #tpu.memory_space<vmem>>, vector<1x32xf32>
    %27 = vector.broadcast %26 : vector<1x32xf32> to vector<16x32xf32>
    %28 = arith.mulf %25, %27 : vector<16x32xf32>
    %cst_25 = arith.constant dense<0.000000e+00> : vector<16xf32>
    %29 = vector.multi_reduction <add>, %28, %cst_25 [1] : vector<16x32xf32> to vector<16xf32>
    %30 = vector.shape_cast %29 : vector<16xf32> to vector<16x1xf32>
    %c0_26 = arith.constant 0 : index
    %c0_27 = arith.constant 0 : index
    %31 = vector.load %arg11[%c0_26, %c0_27] : memref<1x1xf32, #tpu.memory_space<vmem>>, vector<1x1xf32>
    %32 = vector.broadcast %31 : vector<1x1xf32> to vector<16x1xf32>
    %33 = arith.addf %30, %32 : vector<16x1xf32>
    %c0_28 = arith.constant 0 : index
    %c0_29 = arith.constant 0 : index
    %34 = vector.load %arg12[%c0_28, %c0_29] : memref<16x1xf32, #tpu.memory_space<vmem>>, vector<16x1xf32>
    tpu.vector_store %arg12[%c0_28, %c0_29], %33 {strides = array<i32>} : memref<16x1xf32, #tpu.memory_space<vmem>>, vector<16x1xf32>,
    return
  }
  func.func @transform_0(%arg0: i32) -> (i32, i32) {
    %c0_i32 = arith.constant 0 : i32
    %c0_i32_0 = arith.constant 0 : i32
    return %arg0, %c0_i32 : i32, i32
  }
  func.func @transform_1(%arg0: i32) -> (i32, i32) {
    %c0_i32 = arith.constant 0 : i32
    %c0_i32_0 = arith.constant 0 : i32
    return %arg0, %c0_i32 : i32, i32
  }
  func.func @transform_2(%arg0: i32) -> (i32, i32) {
    %c0_i32 = arith.constant 0 : i32
    %c0_i32_0 = arith.constant 0 : i32
    %c0_i32_1 = arith.constant 0 : i32
    return %c0_i32, %c0_i32_0 : i32, i32
  }
  func.func @transform_3(%arg0: i32) -> (i32, i32) {
    %c0_i32 = arith.constant 0 : i32
    %c0_i32_0 = arith.constant 0 : i32
    %c0_i32_1 = arith.constant 0 : i32
    return %c0_i32, %c0_i32_0 : i32, i32
  }
  func.func @transform_4(%arg0: i32) -> (i32, i32) {
    %c0_i32 = arith.constant 0 : i32
    %c0_i32_0 = arith.constant 0 : i32
    %c0_i32_1 = arith.constant 0 : i32
    return %c0_i32, %c0_i32_0 : i32, i32
  }
  func.func @transform_5(%arg0: i32) -> (i32, i32) {
    %c0_i32 = arith.constant 0 : i32
    %c0_i32_0 = arith.constant 0 : i32
    %c0_i32_1 = arith.constant 0 : i32
    return %c0_i32, %c0_i32_0 : i32, i32
  }
  func.func @transform_6(%arg0: i32) -> (i32, i32) {
    %c0_i32 = arith.constant 0 : i32
    %c0_i32_0 = arith.constant 0 : i32
    %c0_i32_1 = arith.constant 0 : i32
    return %c0_i32, %c0_i32_0 : i32, i32
  }
  func.func @transform_7(%arg0: i32) -> (i32, i32) {
    %c0_i32 = arith.constant 0 : i32
    %c0_i32_0 = arith.constant 0 : i32
    %c0_i32_1 = arith.constant 0 : i32
    return %c0_i32, %c0_i32_0 : i32, i32
  }
  func.func @transform_8(%arg0: i32) -> (i32, i32) {
    %c0_i32 = arith.constant 0 : i32
    %c0_i32_0 = arith.constant 0 : i32
    %c0_i32_1 = arith.constant 0 : i32
    return %c0_i32, %c0_i32_0 : i32, i32
  }
  func.func @transform_9(%arg0: i32) -> (i32, i32) {
    %c0_i32 = arith.constant 0 : i32
    %c0_i32_0 = arith.constant 0 : i32
    %c0_i32_1 = arith.constant 0 : i32
    return %c0_i32, %c0_i32_0 : i32, i32
  }
  func.func @transform_10(%arg0: i32) -> (i32, i32) {
    %c0_i32 = arith.constant 0 : i32
    %c0_i32_0 = arith.constant 0 : i32
    %c0_i32_1 = arith.constant 0 : i32
    return %c0_i32, %c0_i32_0 : i32, i32
  }
  func.func @transform_11(%arg0: i32) -> (i32, i32) {
    %c0_i32 = arith.constant 0 : i32
    %c0_i32_0 = arith.constant 0 : i32
    return %arg0, %c0_i32 : i32, i32
  }
}

</mosaic_0001>

<bundles_post_ra>
// kernel: critic_forward.1
= control target key start
LH: loop header
LB: loop body
LE: loop exit
PB: predicated region body
PF: predicated region fallthrough
CT: control target
= control target key end

     0   :  { %s874_s0 = inlined_call_operand.hbm [shape: f32[16,24], index: 0, kind: input, shape index: {}]   ;;  %s875_s1 = inlined_call_operand.hbm [shape: f32[16,12], index: 1, kind: input, shape index: {}]   ;;  %s876_s2 = inlined_call_operand.hbm [shape: f32[24,32], index: 2, kind: input, shape index: {}]   ;;  %s877_s3 = inlined_call_operand.hbm [shape: f32[12,32], index: 3, kind: input, shape index: {}]   ;;  %s878_s4 = inlined_call_operand.vmem [shape: f32[1,32], index: 4, kind: input, shape index: {}]   ;;  %s879_s5 = inlined_call_operand.hbm [shape: f32[32,32], index: 5, kind: input, shape index: {}]   ;;  %s880_s6 = inlined_call_operand.vmem [shape: f32[1,32], index: 6, kind: input, shape index: {}]   ;;  %s881_s7 = inlined_call_operand.hbm [shape: f32[32,32], index: 7, kind: input, shape index: {}]   ;;  %s882_s8 = inlined_call_operand.vmem [shape: f32[1,32], index: 8, kind: input, shape index: {}]   ;;  %s883_s9 = inlined_call_operand.vmem [shape: f32[1,32], index: 9, kind: input, shape index: {}]   ;;  %s884_s10 = inlined_call_operand.<no memory space> [shape: f32[1,1], index: 10, kind: input, shape index: {}]   ;;  %s885_s11 = inlined_call_operand.vmem [shape: f32[16,1], index: 11, kind: output, shape index: {}]  }
   0x1   :  { %v16_v0 = vstv %s884_s10 }
   0x2   :  { %17 = vst [vmem:[#allocation2] sm:$0x1] %v16_v0 }
   0x3   :  { %18 = vsyncpa [#allocation4], 0 }
   0x4   :  { %19 = vsyncpa [#allocation6], 0 }
   0x5   :  { %20 = vsyncpa [#allocation9], 0 }
   0x6   :  { %21 = vsyncpa [#allocation12], 0  ;;  %s743_s19 = smov [#allocation5]   ;;  %s744_s21 = smov [#allocation8]  }
   0x7   :  { %s39_s20 = sshll.u32 %s743_s19, 4  ;;  %s63_s22 = sshll.u32 %s744_s21, 4  ;;  %s40_s20 = int_to_ptr.vmem [resolvable:$true] %s39_s20  ;;  %s64_s22 = int_to_ptr.vmem [resolvable:$true] %s63_s22 }
   0x8   :  { %s623_s23 = scalar_lea.vmem %s40_s20, 256  ;;  %p628_p1 = scmp.lt.s32.totalorder %s40_s20, %s40_s20 }
   0x9   :  { %p624_p0 = scmp.ne.s32.totalorder %s40_s20, %s623_s23  ;;  %p629_p2 = scmp.lt.s32.totalorder %s623_s23, %s623_s23 }
   0xb   :  { %p630_p3 = por %p629_p2, %p628_p1 }
   0xd   :  { %p631_p4 = pnand %p630_p3, %p624_p0 }
   0xf   :  { %634 = shalt.err (!%p631_p4)
}
  0x10   :  { %s745_s24 = smov 128   ;;  %s746_s10 = smov 8  }
  0x11   :  { %45 = dma.hbm_to_vmem [thread:$0]  %s875_s1, 256, %s40_s20, [#allocation6], %s745_s24, %s745_s24, %s746_s10  }
  0x12   :  { %s643_s27 = scalar_lea.vmem %s64_s22, 256  ;;  %p648_p6 = scmp.lt.s32.totalorder %s64_s22, %s64_s22 }
  0x13   :  { %p644_p5 = scmp.ne.s32.totalorder %s64_s22, %s643_s27  ;;  %p649_p7 = scmp.lt.s32.totalorder %s643_s27, %s643_s27 }
  0x15   :  { %p650_p8 = por %p649_p7, %p648_p6 }
  0x17   :  { %p651_p9 = pnand %p650_p8, %p644_p5 }
  0x19   :  { %654 = shalt.err (!%p651_p9)
}
  0x1a   :  { %69 = dma.hbm_to_vmem [thread:$0]  %s877_s3, 256, %s64_s22, [#allocation9], %s745_s24, %s745_s24, %s746_s10  }
  0x1b   :  { %s747_s30 = smov [#allocation3]   ;;  %s748_s13 = smov [#allocation7]  }
  0x1c   :  { %s27_s12 = sshll.u32 %s747_s30, 4  ;;  %s51_s14 = sshll.u32 %s748_s13, 4  ;;  %s28_s12 = int_to_ptr.vmem [resolvable:$true] %s27_s12  ;;  %s52_s14 = int_to_ptr.vmem [resolvable:$true] %s51_s14 }
  0x1d   :  { %s663_s1 = scalar_lea.vmem %s28_s12, 256  ;;  %p668_p11 = scmp.lt.s32.totalorder %s28_s12, %s28_s12 }
  0x1e   :  { %p664_p10 = scmp.ne.s32.totalorder %s28_s12, %s663_s1  ;;  %p669_p12 = scmp.lt.s32.totalorder %s663_s1, %s663_s1 }
  0x20   :  { %p670_p13 = por %p669_p12, %p668_p11 }
  0x22   :  { %p671_p0 = pnand %p670_p13, %p664_p10 }
  0x24   :  { %674 = shalt.err (!%p671_p0)
}
  0x25   :  { %33 = dma.hbm_to_vmem [thread:$0]  %s874_s0, 256, %s28_s12, [#allocation4], %s745_s24, %s745_s24, %s746_s10  }
  0x26   :  { %s683_s3 = scalar_lea.vmem %s52_s14, 384  ;;  %p688_p2 = scmp.lt.s32.totalorder %s52_s14, %s52_s14 }
  0x27   :  { %p684_p1 = scmp.ne.s32.totalorder %s52_s14, %s683_s3  ;;  %p689_p3 = scmp.lt.s32.totalorder %s683_s3, %s683_s3 }
  0x29   :  { %p690_p4 = por %p689_p3, %p688_p2 }
  0x2b   :  { %p691_p5 = pnand %p690_p4, %p684_p1 }
  0x2d   :  { %694 = shalt.err (!%p691_p5)
}
  0x2e   :  { %57 = dma.hbm_to_vmem [thread:$0]  %s876_s2, 384, %s52_s14, [#allocation6], %s745_s24, %s745_s24, %s746_s10  }
  0x2f   :  { %s749_s19 = smov [#allocation10]   ;;  %s750_s21 = smov [#allocation11]  }
  0x30   :  { %s77_s20 = sshll.u32 %s749_s19, 4  ;;  %s91_s22 = sshll.u32 %s750_s21, 4  ;;  %s78_s20 = int_to_ptr.vmem [resolvable:$true] %s77_s20  ;;  %s92_s22 = int_to_ptr.vmem [resolvable:$true] %s91_s22 }
  0x31   :  { %s703_s0 = scalar_lea.vmem %s78_s20, 512  ;;  %p708_p7 = scmp.lt.s32.totalorder %s78_s20, %s78_s20 }
  0x32   :  { %p704_p6 = scmp.ne.s32.totalorder %s78_s20, %s703_s0  ;;  %p709_p8 = scmp.lt.s32.totalorder %s703_s0, %s703_s0 }
  0x34   :  { %p710_p9 = por %p709_p8, %p708_p7 }
  0x36   :  { %p711_p10 = pnand %p710_p9, %p704_p6 }
  0x38   :  { %714 = shalt.err (!%p711_p10)
}
  0x39   :  { %83 = dma.hbm_to_vmem [thread:$0]  %s879_s5, 512, %s78_s20, [#allocation9], %s745_s24, %s745_s24, %s746_s10  }
  0x3a   :  { %s723_s2 = scalar_lea.vmem %s92_s22, 512  ;;  %p728_p12 = scmp.lt.s32.totalorder %s92_s22, %s92_s22 }
  0x3b   :  { %p724_p11 = scmp.ne.s32.totalorder %s92_s22, %s723_s2  ;;  %p729_p13 = scmp.lt.s32.totalorder %s723_s2, %s723_s2 }
  0x3d   :  { %p730_p0 = por %p729_p13, %p728_p12 }
  0x3f   :  { %p731_p1 = pnand %p730_p0, %p724_p11 }
  0x41   :  { %734 = shalt.err (!%p731_p1)
}
  0x42   :  { %97 = dma.hbm_to_vmem [thread:$0]  %s881_s7, 512, %s92_s22, [#allocation12], %s745_s24, %s745_s24, %s746_s10  }
  0x43   :  { %735 = dma.done.wait [#allocation4], 256  }
  0x44   :  { %736 = vsyncadd [#allocation4], 4294967040 }
  0x45   :  { %737 = dma.done.wait [#allocation6], 640  }
  0x46   :  { %738 = vsyncadd [#allocation6], 4294966656 }
  0x47   :  { %739 = dma.done.wait [#allocation9], 768  }
  0x48   :  { %740 = vsyncadd [#allocation9], 4294966528 }
  0x49   :  { %741 = dma.done.wait [#allocation12], 512  }
  0x4a   :  { %742 = vsyncadd [#allocation12], 4294966784  ;;  %vm138_vm0 = vcmask 1043456   ;;  %v130_v1 = vld [vmem:[#allocation8 + $0x8] sm:$0xf]  ;;  %v128_v2 = vld [vmem:[#allocation7 + $0x10] sm:$0xff] }
  0x4b   :  { %v129_v3 = vld [vmem:[#allocation8] sm:$0xff]  ;;  %569 = vmatprep.subr.msk.mxu0 %vm138_vm0, %v130_v1  ;;  %576 = vmatprep.subr.mxu1 %v128_v2  ;;  %v127_v4 = vld [vmem:[#allocation7 + $0x8] sm:$0xff]  ;;  %v124_v5 = vld [vmem:[#allocation5] sm:$0xff]  ;;  %vm131_vm1 = vcmask 97280   ;;  %vm217_vm2 = vcmask 195584   ;;  %vm321_vm3 = vcmask 261120  }
  0x4c   :  { %570 = vmatpush3.msk.msra.mxu0 %vm138_vm0, %v130_v1  ;;  %577 = vmatpush3.msra.mxu1 %v128_v2  ;;  %v125_v6 = vld [vmem:[#allocation5 + $0x8] sm:$0xff]  ;;  %v126_v7 = vld [vmem:[#allocation7] sm:$0xff]  ;;  %v123_v9 = vld [vmem:[#allocation3 + $0x8] sm:$0xff]  ;;  %vm523_vm4 = vcmask 7168  }
  0x4d   :  { %571 = vmatprep.subr.mxu0 %v129_v3  ;;  %578 = vmatprep.subr.mxu1 %v127_v4  ;;  %v122_v8 = vld [vmem:[#allocation3] sm:$0xff]  ;;  %v312_v11 = vld [vmem:[#allocation10 + $0x10] sm:$0xff]  ;;  %v311_v12 = vld [vmem:[#allocation10 + $0x8] sm:$0xff] }
  0x4e   :  { %572 = vmatpush3.msra.mxu0 %v129_v3  ;;  %573 = vmatprep.mubr.msk.f32.mxu0 %vm131_vm1, %v124_v5  ;;  %v313_v10 = vld [vmem:[#allocation10 + $0x18] sm:$0xff]  ;;  %v310_v13 = vld [vmem:[#allocation10] sm:$0xff]  ;;  %v539_v17 = vld [vmem:[%s878_s4] ss:$0 sm:$0xff] }
  0x4f   :  { %579 = vmatpush3.msra.mxu1 %v127_v4  ;;  %574 = vmatmul.mubr.msk.f32.vlgmr.msra.gmra.mxu0 %vm131_vm1, %v125_v6  ;;  %v408_v25 = vld [vmem:[#allocation11 + $0x18] sm:$0xff]  ;;  %v407_v26 = vld [vmem:[#allocation11 + $0x10] sm:$0xff]  ;;  %v406_v27 = vld [vmem:[#allocation11 + $0x8] sm:$0xff] }
  0x50   :  { %580 = vmatprep.subr.mxu1 %v126_v7  ;;  %582 = vmatprep.mubr.msk.f32.mxu1 %vm217_vm2, %v122_v8  ;;  %v405_v28 = vld [vmem:[#allocation11] sm:$0xff]  ;;  %v540_v29 = vld [vmem:[%s880_s6] ss:$0 sm:$0xff] }
  0x51   :  { %581 = vmatpush3.msra.mxu1 %v126_v7  ;;  %585 = vmatprep.subr.mxu0 %v313_v10  ;;  %v543_v36 = vld [vmem:[%s882_s8] ss:$0 sm:$0xff] }
  0x52   :  { %583 = vmatmul.mubr.msk.f32.vlgmr.msra.gmra.mxu1 %vm217_vm2, %v123_v9  ;;  %586 = vmatpush3.msra.mxu0 %v313_v10  ;;  %v546_v43 = vld [vmem:[%s883_s9] ss:$0 sm:$0xff] }
  0x53   :  { %587 = vmatprep.subr.mxu0 %v312_v11  ;;  %596 = vmatprep.subr.mxu1 %v408_v25  ;;  %v547_v48 = vld [vmem:[#allocation2] ss:$0 sm:$0xff] }
  0x54   :  { %588 = vmatpush3.msra.mxu0 %v312_v11  ;;  %597 = vmatpush3.msra.mxu1 %v408_v25 }
  0x55   :  { %589 = vmatprep.subr.mxu0 %v311_v12  ;;  %598 = vmatprep.subr.mxu1 %v407_v26 }
  0x56   :  { %590 = vmatpush3.msra.mxu0 %v311_v12  ;;  %599 = vmatpush3.msra.mxu1 %v407_v26 }
  0x57   :  { %591 = vmatprep.subr.mxu0 %v310_v13  ;;  %600 = vmatprep.subr.mxu1 %v406_v27 }
  0x58   :  { %592 = vmatpush3.msra.mxu0 %v310_v13  ;;  %601 = vmatpush3.msra.mxu1 %v406_v27 }
  0x59   :  { %602 = vmatprep.subr.mxu1 %v405_v28 }
  0x5a   :  { %603 = vmatpush3.msra.mxu1 %v405_v28 }
 0x10f   :  { %v575_v14 = vpop.f32.mrf.mxu0 }
 0x111   :  { %v208_v18 = vpop.f32.mrf.mxu0 }
 0x112   :  { %v584_v15 = vpop.f32.mrf.mxu1 }
 0x113   :  { %v296_v16 = vadd.f32 %v584_v15, %v575_v14 }
 0x114   :  { %v290_v19 = vpop.f32.mrf.mxu1 }
 0x115   :  { %v291_v20 = vadd.f32 %v290_v19, %v208_v18  ;;  %v307_v21 = vadd.f32 %v539_v17, %v296_v16 }
 0x117   :  { %v306_v22 = vadd.f32 %v539_v17, %v291_v20  ;;  %v309_v24 = vmax.f32 %v307_v21, 0.0 }
 0x119   :  { %v308_v23 = vmax.f32 %v306_v22, 0.0 }
 0x11b   :  { %593 = vmatprep.mubr.msk.f32.mxu0 %vm321_vm3, %v308_v23 }
 0x11c   :  { %594 = vmatmul.mubr.msk.f32.vlgmr.msra.gmra.mxu0 %vm321_vm3, %v309_v24 }
 0x1dc   :  { %v595_v30 = vpop.f32.mrf.mxu0 }
 0x1dd   :  { %v400_v31 = vadd.f32 %v595_v30, %v540_v29 }
 0x1de   :  { %v394_v32 = vpop.f32.mrf.mxu0 }
 0x1df   :  { %v395_v33 = vadd.f32 %v540_v29, %v394_v32  ;;  %v404_v35 = vmax.f32 %v400_v31, 0.0 }
 0x1e1   :  { %v403_v34 = vmax.f32 %v395_v33, 0.0 }
 0x1e3   :  { %604 = vmatprep.mubr.msk.f32.mxu1 %vm321_vm3, %v403_v34 }
 0x1e4   :  { %605 = vmatmul.mubr.msk.f32.vlgmr.msra.gmra.mxu1 %vm321_vm3, %v404_v35 }
 0x2a4   :  { %v606_v37 = vpop.f32.mrf.mxu1 }
 0x2a5   :  { %v494_v38 = vadd.f32 %v606_v37, %v543_v36 }
 0x2a6   :  { %v488_v39 = vpop.f32.mrf.mxu1 }
 0x2a7   :  { %v489_v40 = vadd.f32 %v543_v36, %v488_v39  ;;  %v498_v41 = vmax.f32 %v494_v38, 0.0 }
 0x2a9   :  { %v497_v42 = vmax.f32 %v489_v40, 0.0  ;;  %v507_v46 = vmul.f32 %v546_v43, %v498_v41 }
 0x2ab   :  { %v506_v44 = vmul.f32 %v546_v43, %v497_v42  ;;  %v511_v47 = vsel %vm321_vm3, %v507_v46, 0.0 }
 0x2ad   :  { %v508_v45 = vsel %vm321_vm3, %v506_v44, 0.0 }
 0x2ae   :  { %509 = vadd.xlane.f32.xlu0 %v508_v45 }
 0x2b2   :  { %512 = vadd.xlane.f32.xlu0 %v511_v47 }
 0x337   :  { %v510_v49 = vpop.xlane.xlu0 %509 }
 0x338   :  { %v521_v50 = vadd.f32 %v547_v48, %v510_v49 }
 0x33a   :  { %524 = vst.msk [vmem:[%s885_s11] sm:$0xff] %vm523_vm4, %v521_v50 }
 0x33b   :  { %v513_v51 = vpop.xlane.xlu0 %512 }
 0x33c   :  { %v522_v52 = vadd.f32 %v547_v48, %v513_v51 }
 0x33e   :  { %525 = vst.msk [vmem:[%s885_s11 + $0x8] sm:$0xff] %vm523_vm4, %v522_v52 }
 0x33f   :  { %530 = vsyncpa [#allocation4], 1 }
 0x340   :  { %531 = vsyncpa [#allocation6], 1 }
 0x341   :  { %532 = vsyncpa [#allocation9], 1 }
 0x342   :  { %533 = vsyncpa [#allocation12], 1 }

</bundles_post_ra>
